<compile_context>
chip_gen: v7x
topology: tpu7x:2x2x1
jax: 0.10.0
libtpu: 0.0.40
codegen_flags: <defaults>
</compile_context>

<pallas_src>
import functools

import jax
import jax.numpy as jnp
import numpy as np
from jax.experimental import pallas as pl
from jax.experimental.pallas import tpu as pltpu

ROW_ALIGN = 16            # bf16 sublane tile height; keeps packed-weight slices aligned


# ------------------------------ Pallas kernel -------------------------------

def tcn_kernel(c0, w0_off, blocks, xw_ref, wp_ref, lw_ref, o_ref):
    """TCNBase forward for one batch tile.

    Activations are (channels, Bt*L1): channels on sublanes, flattened
    batch*time on lanes.  All conv/projection weights live in one packed bf16
    buffer `wp_ref`; each weight carries its folded-BN bias as an extra column
    that multiplies a ones-row in the activations (no lane-sparse bias inputs).
    """
    _, Bt, out_pad = o_ref.shape
    M = xw_ref.shape[1]                      # Bt * L1 (lane axis)
    L1 = M // Bt

    # Per-sequence boundary masks along the lane axis (position of each column
    # within its length-L1 segment); reused by every k=3 conv in every block.
    pos = jax.lax.broadcasted_iota(jnp.int32, (1, M), 1) % L1
    mask_lo = pos > 0                        # column t-1 exists in this sequence
    mask_hi = pos < (L1 - 1)                 # column t+1 exists in this sequence
    ones_row = jnp.ones((1, M), jnp.float32)

    def shift_back(h):                       # h[:, t-1], zero at sequence starts
        return jnp.where(mask_lo, pltpu.roll(h, shift=1, axis=1), 0.0)

    def shift_fwd(h):                        # h[:, t+1], zero at sequence ends
        return jnp.where(mask_hi, pltpu.roll(h, shift=M - 1, axis=1), 0.0)

    def weight(off, rows, cols):             # static slice of the packed weights
        return wp_ref[off:off + rows, 0:cols]

    def matmul(w_bf16, act_f32):             # (Cout, K) @ (K, M) -> (Cout, M) f32
        return jnp.dot(w_bf16, act_f32.astype(jnp.bfloat16),
                       preferred_element_type=jnp.float32)

    # Initial k=7 / stride-2 conv (im2col'd on the host, ones row appended),
    # BN folded into the weights, then ReLU.  xw_ref is already bf16.
    w0 = weight(w0_off, c0, 8)
    h = jnp.maximum(jnp.dot(w0, xw_ref[...],
                            preferred_element_type=jnp.float32), 0.0)

    # TCN residual blocks (BN folded into weights; dropout = identity in eval).
    for cin, cout, w1_off, w2_off, p_off in blocks:
        if p_off >= 0:                       # 1x1 projection for channel change
            pw = weight(p_off, cout, cin + 1)
            identity = matmul(pw, jnp.concatenate([h, ones_row], axis=0))
        else:
            identity = h
        w1 = weight(w1_off, cout, 3 * cin + 1)
        hcat = jnp.concatenate([shift_back(h), h, shift_fwd(h), ones_row], axis=0)
        y = jnp.maximum(matmul(w1, hcat), 0.0)       # conv-bn-relu-(drop)
        w2 = weight(w2_off, cout, 3 * cout + 1)
        ycat = jnp.concatenate([shift_back(y), y, shift_fwd(y), ones_row], axis=0)
        y = jnp.maximum(matmul(w2, ycat), 0.0)       # conv-bn-relu-(drop)
        h = jnp.maximum(y + identity, 0.0)           # residual add + relu

    # Global average pool over length + linear head, written as one lane-dense
    # (Bt, out_pad) store.  Bt and C_last are tiny, so the head is done with
    # broadcast-multiply + sublane-reduce (VPU/XLU) in f32 rather than a
    # transposed matmul.
    c_last = h.shape[0]
    lw = lw_ref[0:c_last, :]                 # (C_last, out_pad) f32
    lb = lw_ref[c_last:c_last + 1, :]        # (1, out_pad)      f32
    rows = []
    for b in range(Bt):
        pooled_b = jnp.mean(h[:, b * L1:(b + 1) * L1], axis=1, keepdims=True)
        rows.append(jnp.sum(pooled_b * lw, axis=0, keepdims=True) + lb)
    o_ref[0] = jnp.concatenate(rows, axis=0)


# ------------------------------ host-side packing ----------------------------

def _round_up(n, m):
    return ((n + m - 1) // m) * m


def build_kernel_weights(params):
    """Fold eval-mode BatchNorm into the conv weights, append each bias as an
    extra weight column (matched by a ones-row in the activations), transpose
    to the kernel's (Cout, K) orientation, and pack everything into one bf16
    buffer.  Returns (w_pack, lw_pad, (c0, w0_off, blocks_meta))."""
    mats = []                                               # (name, (rows, cols) f32)

    w0f = params['w0'] * params['bn0_scale']                # (7, C0)
    b0f = params['b0'] * params['bn0_scale'] + params['bn0_shift']
    mats.append(('w0', jnp.concatenate([w0f.T, b0f.T], axis=1)))      # (C0, 8)

    shapes = []
    for bi, blk in enumerate(params['blocks']):
        _, cin, cout = blk['w1'].shape
        w1f = (blk['w1'] * blk['s1']).reshape(3 * cin, cout)
        b1f = blk['b1'] * blk['s1'] + blk['sh1']
        mats.append((f'{bi}w1', jnp.concatenate([w1f.T, b1f.T], axis=1)))
        w2f = (blk['w2'] * blk['s2']).reshape(3 * cout, cout)
        b2f = blk['b2'] * blk['s2'] + blk['sh2']
        mats.append((f'{bi}w2', jnp.concatenate([w2f.T, b2f.T], axis=1)))
        if 'pw' in blk:
            mats.append((f'{bi}pw',
                         jnp.concatenate([blk['pw'].T, blk['pb'].T], axis=1)))
        shapes.append((cin, cout, 'pw' in blk))

    packw = _round_up(max(int(m.shape[1]) for _, m in mats), 128)
    offs, chunks, row = {}, [], 0
    for name, m in mats:
        offs[name] = row
        rows_p = _round_up(int(m.shape[0]), ROW_ALIGN)
        chunks.append(jnp.zeros((rows_p, packw), jnp.float32)
                      .at[:m.shape[0], :m.shape[1]].set(m))
        row += rows_p
    w_pack = jnp.concatenate(chunks, axis=0).astype(jnp.bfloat16)

    blocks_meta = tuple(
        (cin, cout, offs[f'{bi}w1'], offs[f'{bi}w2'], offs.get(f'{bi}pw', -1))
        for bi, (cin, cout, _) in enumerate(shapes))

    # Head: [lw; lb] padded along lanes to a multiple of 128 (kept f32 -- tiny).
    c_last, out_size = params['lw'].shape
    out_pad = _round_up(out_size, 128)
    lw_aug = jnp.concatenate([params['lw'], params['lb']], axis=0)    # (C+1, out)
    lw_pad = jnp.zeros((c_last + 1, out_pad), jnp.float32).at[:, :out_size].set(lw_aug)

    c0 = params['w0'].shape[1]
    return w_pack, lw_pad, (c0, offs['w0'], blocks_meta)


def _pick_bt(B, L1, *, max_m=4096, min_steps=2):
    """Batch-tile size: lane-tile-aligned blocks (Bt*L1 % 128 == 0, or full),
    at least `min_steps` grid steps (keeps both v7x TensorCores busy), and the
    largest M = Bt*L1 <= max_m (amortizes per-step overhead on v5e/v6e)."""
    min_steps = max(1, min(min_steps, B))
    divisors = [c for c in range(1, B + 1) if B % c == 0]

    def ok(c, need_steps, need_maxm):
        m = c * L1
        if m % 128 != 0 and c != B:          # keep the xw block lane-aligned
            return False
        if need_maxm and m > max(max_m, L1):
            return False
        if need_steps and (B // c) < min_steps:
            return False
        return True

    for need_steps, need_maxm in ((True, True), (False, True), (False, False)):
        cands = [c for c in divisors if ok(c, need_steps, need_maxm)]
        if cands:
            return max(cands)
    return B


# ------------------------------ JAX wrapper ----------------------------------

def tcn_forward(x, params, output_size):
    B = x.shape[0]
    x_flat = x.reshape(B, -1).astype(jnp.float32)             # x.view(B, 1, -1)
    L = x_flat.shape[1]
    L1 = (L + 2 * 3 - 7) // 2 + 1                             # stride-2 out len

    # Glue: im2col for the k=7 / stride-2 / pad=3 initial conv, laid out
    # lane-dense as (8, B*L1): 7 taps + a ones row (bias), batch*time on lanes.
    # TODO(synk): for long sequences build these taps in-kernel via strided
    #   pl.ds slices of the raw padded row instead of host-side im2col.
    x_pad = jnp.pad(x_flat, ((0, 0), (3, 3)))
    idx = 2 * jnp.arange(L1)[:, None] + jnp.arange(7)[None, :]
    xw = jnp.transpose(x_pad[:, idx], (2, 0, 1)).reshape(7, B * L1)
    xw_aug = jnp.concatenate([xw, jnp.ones((1, B * L1), jnp.float32)],
                             axis=0).astype(jnp.bfloat16)

    w_pack, lw_pad, (c0, w0_off, blocks_meta) = build_kernel_weights(params)
    out_pad = lw_pad.shape[1]

    Bt = _pick_bt(B, L1, max_m=4096, min_steps=2)
    steps = B // Bt

    out3 = pl.pallas_call(
        functools.partial(tcn_kernel, c0, w0_off, blocks_meta),
        out_shape=jax.ShapeDtypeStruct((steps, Bt, out_pad), jnp.float32),
        grid=(steps,),
        in_specs=[
            pl.BlockSpec((8, Bt * L1), lambda b: (0, b)),     # im2col windows
            pl.BlockSpec(w_pack.shape, lambda b: (0, 0)),     # packed conv weights
            pl.BlockSpec(lw_pad.shape, lambda b: (0, 0)),     # head weights
        ],
        out_specs=pl.BlockSpec((1, Bt, out_pad), lambda b: (b, 0, 0)),
        compiler_params=pltpu.CompilerParams(
            dimension_semantics=("parallel",),
            vmem_limit_bytes=32 * 1024 * 1024),
    )(xw_aug, w_pack, lw_pad)

    return out3.reshape(B, out_pad)[:, :output_size]


def make_params(key, num_channels, output_size):
    """Deterministic synthetic parameters (conv weights + BN scale/shift)."""
    keys = iter(jax.random.split(key, 128))

    def rnd(shape, scale=0.1):
        return (scale * jax.random.normal(next(keys), shape)).astype(jnp.float32)

    C0 = num_channels[0]
    params = {
        'w0': rnd((7, C0)),            # Conv1d(1, C0, k=7) weight as (K, Cout)
        'b0': rnd((1, C0)),
        'bn0_scale': 1.0 + rnd((1, C0)),
        'bn0_shift': rnd((1, C0)),
        'blocks': [],
    }
    cin = C0
    for cout in num_channels:
        blk = dict(
            w1=rnd((3, cin, cout)), b1=rnd((1, cout)),
            s1=1.0 + rnd((1, cout)), sh1=rnd((1, cout)),
            w2=rnd((3, cout, cout)), b2=rnd((1, cout)),
            s2=1.0 + rnd((1, cout)), sh2=rnd((1, cout)),
        )
        if cin != cout:
            blk['pw'] = rnd((cin, cout))
            blk['pb'] = rnd((1, cout))
        params['blocks'].append(blk)
        cin = cout
    params['lw'] = rnd((num_channels[-1], output_size))
    params['lb'] = rnd((1, output_size))
    return params


# ---------------------- plain-JAX reference (for checking) -------------------

def tcn_reference(x, params):
    B = x.shape[0]
    xf = x.reshape(B, -1).astype(jnp.float32)
    L1 = (xf.shape[1] + 2 * 3 - 7) // 2 + 1
    xp = jnp.pad(xf, ((0, 0), (3, 3)))
    idx = 2 * jnp.arange(L1)[:, None] + jnp.arange(7)[None, :]
    xw = xp[:, idx]
    h = jnp.einsum('blk,kc->blc', xw, params['w0']) + params['b0']
    h = jax.nn.relu(h * params['bn0_scale'] + params['bn0_shift'])

    def conv3(h, w, b):
        hp = jnp.pad(h, ((0, 0), (1, 1), (0, 0)))
        return (jnp.einsum('blc,cd->bld', hp[:, :-2], w[0])
                + jnp.einsum('blc,cd->bld', hp[:, 1:-1], w[1])
                + jnp.einsum('blc,cd->bld', hp[:, 2:], w[2]) + b)

    for blk in params['blocks']:
        if 'pw' in blk:
            ident = jnp.einsum('blc,cd->bld', h, blk['pw']) + blk['pb']
        else:
            ident = h
        y = jax.nn.relu(conv3(h, blk['w1'], blk['b1']) * blk['s1'] + blk['sh1'])
        y = jax.nn.relu(conv3(y, blk['w2'], blk['b2']) * blk['s2'] + blk['sh2'])
        h = jax.nn.relu(y + ident)
    pooled = h.mean(axis=1)
    return pooled @ params['lw'] + params['lb']


# ----------------------------------- main ------------------------------------

if __name__ == "__main__":
    B = 4
    input_size = 256          # flattened sequence length after x.view(B, 1, -1)
    output_size = 10
    num_channels = [8, 16]    # second block exercises the 1x1 projection path

    key = jax.random.PRNGKey(0)
    kx, kp = jax.random.split(key)
    x = jax.random.normal(kx, (B, input_size), dtype=jnp.float32)
    params = make_params(kp, num_channels, output_size)

    out = tcn_forward(x, params, output_size)
    out = jax.block_until_ready(out)

    ref = tcn_reference(x, params)
    # bf16 MXU operands vs. an all-f32 reference -> loose-but-meaningful check.
    np.testing.assert_allclose(np.asarray(out), np.asarray(ref),
                               rtol=5e-2, atol=2e-2)
    print("KERNEL_OK")
</pallas_src>

<mosaic_0001>
module attributes {stable_mosaic.version = 11 : i64} {
  func.func @tcn_kernel(%arg0: i32, %arg1: memref<8x256xbf16, #tpu.memory_space<vmem>>, %arg2: memref<96x128xbf16, #tpu.memory_space<vmem>>, %arg3: memref<17x128xf32, #tpu.memory_space<vmem>>, %arg4: memref<1x2x128xf32, #tpu.memory_space<vmem>>) attributes {dimension_semantics = [#tpu.dimension_semantics<parallel>], iteration_bounds = array<i64: 2>, scalar_prefetch = 0 : i64, scratch_operands = 0 : i64, tpu.core_type = #tpu.core_type<tc>, window_params = [{transform_indices = @transform_0, window_bounds = array<i64: 8, 256>}, {pipeline_mode = #tpu.pipeline_mode<synchronous>, transform_indices = @transform_1, window_bounds = array<i64: 96, 128>}, {pipeline_mode = #tpu.pipeline_mode<synchronous>, transform_indices = @transform_2, window_bounds = array<i64: 17, 128>}, {transform_indices = @transform_3, window_bounds = array<i64: 1, 2, 128>}]} {
    %0 = tpu.iota {dimensions = array<i32: 1>} : vector<1x256xi32>
    %c128_i32 = arith.constant 128 : i32
    %c0_i32 = arith.constant 0 : i32
    %1 = arith.cmpi eq, %c128_i32, %c0_i32 : i32
    %c1_i32 = arith.constant 1 : i32
    %2 = arith.select %1, %c1_i32, %c128_i32 : i32
    %3 = vector.broadcast %2 : i32 to vector<1x256xi32>
    %4 = arith.remsi %0, %3 : vector<1x256xi32>
    %c0_i32_0 = arith.constant 0 : i32
    %5 = vector.broadcast %c0_i32_0 : i32 to vector<1x256xi32>
    %6 = arith.cmpi ne, %4, %5 : vector<1x256xi32>
    %c0_i32_1 = arith.constant 0 : i32
    %7 = vector.broadcast %c0_i32_1 : i32 to vector<1x256xi32>
    %8 = arith.cmpi slt, %4, %7 : vector<1x256xi32>
    %c0_i32_2 = arith.constant 0 : i32
    %9 = arith.cmpi slt, %2, %c0_i32_2 : i32
    %10 = vector.broadcast %9 : i1 to vector<1x256xi1>
    %11 = vector.broadcast %10 : vector<1x256xi1> to vector<1x256xi1>
    %12 = arith.xori %8, %11 : vector<1x256xi1>
    %13 = arith.andi %12, %6 : vector<1x256xi1>
    %14 = vector.broadcast %2 : i32 to vector<1x256xi32>
    %15 = arith.addi %4, %14 : vector<1x256xi32>
    %16 = arith.select %13, %15, %4 : vector<1x256xi1>, vector<1x256xi32>
    %c0_i32_3 = arith.constant 0 : i32
    %17 = vector.broadcast %c0_i32_3 : i32 to vector<1x256xi32>
    %18 = arith.cmpi sgt, %16, %17 : vector<1x256xi32>
    %c127_i32 = arith.constant 127 : i32
    %19 = vector.broadcast %c127_i32 : i32 to vector<1x256xi32>
    %20 = arith.cmpi slt, %16, %19 : vector<1x256xi32>
    %cst = arith.constant 1.000000e+00 : f32
    %21 = vector.broadcast %cst : f32 to vector<1x256xf32>
    %c0 = arith.constant 0 : index
    %c0_4 = arith.constant 0 : index
    %22 = vector.load %arg2[%c0, %c0_4] : memref<96x128xbf16, #tpu.memory_space<vmem>>, vector<8x8xbf16>
    %c0_5 = arith.constant 0 : index
    %c0_6 = arith.constant 0 : index
    %23 = vector.load %arg1[%c0_5, %c0_6] : memref<8x256xbf16, #tpu.memory_space<vmem>>, vector<8x256xbf16>
    %cst_7 = arith.constant dense<0.000000e+00> : vector<8x256xf32>
    %24 = tpu.matmul %22, %23, %cst_7 {dimension_numbers = #tpu.dot_dimension_numbers<[1], [0], [0], [1], [0, 0, 1, 1], [], []>} : vector<8x8xbf16>, vector<8x256xbf16>, vector<8x256xf32> -> vector<8x256xf32>
    %cst_8 = arith.constant 0.000000e+00 : f32
    %25 = vector.broadcast %cst_8 : f32 to vector<8x256xf32>
    %26 = arith.maximumf %24, %25 : vector<8x256xf32>
    %c16 = arith.constant 16 : index
    %c0_9 = arith.constant 0 : index
    %27 = vector.load %arg2[%c16, %c0_9] : memref<96x128xbf16, #tpu.memory_space<vmem>>, vector<8x25xbf16>
    %c1_i32_10 = arith.constant 1 : i32
    %28 = tpu.dynamic_rotate %26 by %c1_i32_10 dim 1 : vector<8x256xf32>, i32 -> vector<8x256xf32>
    %cst_11 = arith.constant 0.000000e+00 : f32
    %29 = vector.shape_cast %18 : vector<1x256xi1> to vector<1x256xi1>
    %30 = vector.broadcast %29 : vector<1x256xi1> to vector<8x256xi1>
    %31 = vector.broadcast %cst_11 : f32 to vector<8x256xf32>
    %32 = arith.select %30, %28, %31 : vector<8x256xi1>, vector<8x256xf32>
    %c255_i32 = arith.constant 255 : i32
    %33 = tpu.dynamic_rotate %26 by %c255_i32 dim 1 : vector<8x256xf32>, i32 -> vector<8x256xf32>
    %cst_12 = arith.constant 0.000000e+00 : f32
    %34 = vector.shape_cast %20 : vector<1x256xi1> to vector<1x256xi1>
    %35 = vector.broadcast %34 : vector<1x256xi1> to vector<8x256xi1>
    %36 = vector.broadcast %cst_12 : f32 to vector<8x256xf32>
    %37 = arith.select %35, %33, %36 : vector<8x256xi1>, vector<8x256xf32>
    %38 = tpu.concatenate %32, %26, %37, %21 in 0 : vector<8x256xf32>, vector<8x256xf32>, vector<8x256xf32>, vector<1x256xf32> -> vector<25x256xf32>
    %39 = arith.truncf %38 : vector<25x256xf32> to vector<25x256xbf16>
    %cst_13 = arith.constant dense<0.000000e+00> : vector<8x256xf32>
    %40 = tpu.matmul %27, %39, %cst_13 {dimension_numbers = #tpu.dot_dimension_numbers<[1], [0], [0], [1], [0, 0, 1, 1], [], []>} : vector<8x25xbf16>, vector<25x256xbf16>, vector<8x256xf32> -> vector<8x256xf32>
    %cst_14 = arith.constant 0.000000e+00 : f32
    %41 = vector.broadcast %cst_14 : f32 to vector<8x256xf32>
    %42 = arith.maximumf %40, %41 : vector<8x256xf32>
    %c32 = arith.constant 32 : index
    %c0_15 = arith.constant 0 : index
    %43 = vector.load %arg2[%c32, %c0_15] : memref<96x128xbf16, #tpu.memory_space<vmem>>, vector<8x25xbf16>
    %c1_i32_16 = arith.constant 1 : i32
    %44 = tpu.dynamic_rotate %42 by %c1_i32_16 dim 1 : vector<8x256xf32>, i32 -> vector<8x256xf32>
    %cst_17 = arith.constant 0.000000e+00 : f32
    %45 = vector.shape_cast %18 : vector<1x256xi1> to vector<1x256xi1>
    %46 = vector.broadcast %45 : vector<1x256xi1> to vector<8x256xi1>
    %47 = vector.broadcast %cst_17 : f32 to vector<8x256xf32>
    %48 = arith.select %46, %44, %47 : vector<8x256xi1>, vector<8x256xf32>
    %c255_i32_18 = arith.constant 255 : i32
    %49 = tpu.dynamic_rotate %42 by %c255_i32_18 dim 1 : vector<8x256xf32>, i32 -> vector<8x256xf32>
    %cst_19 = arith.constant 0.000000e+00 : f32
    %50 = vector.shape_cast %20 : vector<1x256xi1> to vector<1x256xi1>
    %51 = vector.broadcast %50 : vector<1x256xi1> to vector<8x256xi1>
    %52 = vector.broadcast %cst_19 : f32 to vector<8x256xf32>
    %53 = arith.select %51, %49, %52 : vector<8x256xi1>, vector<8x256xf32>
    %54 = tpu.concatenate %48, %42, %53, %21 in 0 : vector<8x256xf32>, vector<8x256xf32>, vector<8x256xf32>, vector<1x256xf32> -> vector<25x256xf32>
    %55 = arith.truncf %54 : vector<25x256xf32> to vector<25x256xbf16>
    %cst_20 = arith.constant dense<0.000000e+00> : vector<8x256xf32>
    %56 = tpu.matmul %43, %55, %cst_20 {dimension_numbers = #tpu.dot_dimension_numbers<[1], [0], [0], [1], [0, 0, 1, 1], [], []>} : vector<8x25xbf16>, vector<25x256xbf16>, vector<8x256xf32> -> vector<8x256xf32>
    %cst_21 = arith.constant 0.000000e+00 : f32
    %57 = vector.broadcast %cst_21 : f32 to vector<8x256xf32>
    %58 = arith.maximumf %56, %57 : vector<8x256xf32>
    %59 = arith.addf %58, %26 : vector<8x256xf32>
    %cst_22 = arith.constant 0.000000e+00 : f32
    %60 = vector.broadcast %cst_22 : f32 to vector<8x256xf32>
    %61 = arith.maximumf %59, %60 : vector<8x256xf32>
    %c80 = arith.constant 80 : index
    %c0_23 = arith.constant 0 : index
    %62 = vector.load %arg2[%c80, %c0_23] : memref<96x128xbf16, #tpu.memory_space<vmem>>, vector<16x9xbf16>
    %63 = tpu.concatenate %61, %21 in 0 : vector<8x256xf32>, vector<1x256xf32> -> vector<9x256xf32>
    %64 = arith.truncf %63 : vector<9x256xf32> to vector<9x256xbf16>
    %cst_24 = arith.constant dense<0.000000e+00> : vector<16x256xf32>
    %65 = tpu.matmul %62, %64, %cst_24 {dimension_numbers = #tpu.dot_dimension_numbers<[1], [0], [0], [1], [0, 0, 1, 1], [], []>} : vector<16x9xbf16>, vector<9x256xbf16>, vector<16x256xf32> -> vector<16x256xf32>
    %c48 = arith.constant 48 : index
    %c0_25 = arith.constant 0 : index
    %66 = vector.load %arg2[%c48, %c0_25] : memref<96x128xbf16, #tpu.memory_space<vmem>>, vector<16x25xbf16>
    %c1_i32_26 = arith.constant 1 : i32
    %67 = tpu.dynamic_rotate %61 by %c1_i32_26 dim 1 : vector<8x256xf32>, i32 -> vector<8x256xf32>
    %cst_27 = arith.constant 0.000000e+00 : f32
    %68 = vector.shape_cast %18 : vector<1x256xi1> to vector<1x256xi1>
    %69 = vector.broadcast %68 : vector<1x256xi1> to vector<8x256xi1>
    %70 = vector.broadcast %cst_27 : f32 to vector<8x256xf32>
    %71 = arith.select %69, %67, %70 : vector<8x256xi1>, vector<8x256xf32>
    %c255_i32_28 = arith.constant 255 : i32
    %72 = tpu.dynamic_rotate %61 by %c255_i32_28 dim 1 : vector<8x256xf32>, i32 -> vector<8x256xf32>
    %cst_29 = arith.constant 0.000000e+00 : f32
    %73 = vector.shape_cast %20 : vector<1x256xi1> to vector<1x256xi1>
    %74 = vector.broadcast %73 : vector<1x256xi1> to vector<8x256xi1>
    %75 = vector.broadcast %cst_29 : f32 to vector<8x256xf32>
    %76 = arith.select %74, %72, %75 : vector<8x256xi1>, vector<8x256xf32>
    %77 = tpu.concatenate %71, %61, %76, %21 in 0 : vector<8x256xf32>, vector<8x256xf32>, vector<8x256xf32>, vector<1x256xf32> -> vector<25x256xf32>
    %78 = arith.truncf %77 : vector<25x256xf32> to vector<25x256xbf16>
    %cst_30 = arith.constant dense<0.000000e+00> : vector<16x256xf32>
    %79 = tpu.matmul %66, %78, %cst_30 {dimension_numbers = #tpu.dot_dimension_numbers<[1], [0], [0], [1], [0, 0, 1, 1], [], []>} : vector<16x25xbf16>, vector<25x256xbf16>, vector<16x256xf32> -> vector<16x256xf32>
    %cst_31 = arith.constant 0.000000e+00 : f32
    %80 = vector.broadcast %cst_31 : f32 to vector<16x256xf32>
    %81 = arith.maximumf %79, %80 : vector<16x256xf32>
    %c64 = arith.constant 64 : index
    %c0_32 = arith.constant 0 : index
    %82 = vector.load %arg2[%c64, %c0_32] : memref<96x128xbf16, #tpu.memory_space<vmem>>, vector<16x49xbf16>
    %c1_i32_33 = arith.constant 1 : i32
    %83 = tpu.dynamic_rotate %81 by %c1_i32_33 dim 1 : vector<16x256xf32>, i32 -> vector<16x256xf32>
    %cst_34 = arith.constant 0.000000e+00 : f32
    %84 = vector.shape_cast %18 : vector<1x256xi1> to vector<1x256xi1>
    %85 = vector.broadcast %84 : vector<1x256xi1> to vector<16x256xi1>
    %86 = vector.broadcast %cst_34 : f32 to vector<16x256xf32>
    %87 = arith.select %85, %83, %86 : vector<16x256xi1>, vector<16x256xf32>
    %c255_i32_35 = arith.constant 255 : i32
    %88 = tpu.dynamic_rotate %81 by %c255_i32_35 dim 1 : vector<16x256xf32>, i32 -> vector<16x256xf32>
    %cst_36 = arith.constant 0.000000e+00 : f32
    %89 = vector.shape_cast %20 : vector<1x256xi1> to vector<1x256xi1>
    %90 = vector.broadcast %89 : vector<1x256xi1> to vector<16x256xi1>
    %91 = vector.broadcast %cst_36 : f32 to vector<16x256xf32>
    %92 = arith.select %90, %88, %91 : vector<16x256xi1>, vector<16x256xf32>
    %93 = tpu.concatenate %87, %81, %92, %21 in 0 : vector<16x256xf32>, vector<16x256xf32>, vector<16x256xf32>, vector<1x256xf32> -> vector<49x256xf32>
    %94 = arith.truncf %93 : vector<49x256xf32> to vector<49x256xbf16>
    %cst_37 = arith.constant dense<0.000000e+00> : vector<16x256xf32>
    %95 = tpu.matmul %82, %94, %cst_37 {dimension_numbers = #tpu.dot_dimension_numbers<[1], [0], [0], [1], [0, 0, 1, 1], [], []>} : vector<16x49xbf16>, vector<49x256xbf16>, vector<16x256xf32> -> vector<16x256xf32>
    %cst_38 = arith.constant 0.000000e+00 : f32
    %96 = vector.broadcast %cst_38 : f32 to vector<16x256xf32>
    %97 = arith.maximumf %95, %96 : vector<16x256xf32>
    %98 = arith.addf %97, %65 : vector<16x256xf32>
    %cst_39 = arith.constant 0.000000e+00 : f32
    %99 = vector.broadcast %cst_39 : f32 to vector<16x256xf32>
    %100 = arith.maximumf %98, %99 : vector<16x256xf32>
    %c0_40 = arith.constant 0 : index
    %c0_41 = arith.constant 0 : index
    %101 = vector.load %arg3[%c0_40, %c0_41] : memref<17x128xf32, #tpu.memory_space<vmem>>, vector<16x128xf32>
    %c16_42 = arith.constant 16 : index
    %c0_43 = arith.constant 0 : index
    %102 = vector.load %arg3[%c16_42, %c0_43] : memref<17x128xf32, #tpu.memory_space<vmem>>, vector<1x128xf32>
    %103 = vector.extract_strided_slice %100 {offsets = [0, 0], sizes = [16, 128], strides = [1, 1]} : vector<16x256xf32> to vector<16x128xf32>
    %cst_44 = arith.constant dense<0.000000e+00> : vector<16xf32>
    %104 = vector.multi_reduction <add>, %103, %cst_44 [1] : vector<16x128xf32> to vector<16xf32>
    %105 = vector.shape_cast %104 : vector<16xf32> to vector<16x1xf32>
    %cst_45 = arith.constant 1.280000e+02 : f32
    %106 = vector.broadcast %cst_45 : f32 to vector<16x1xf32>
    %107 = arith.divf %105, %106 : vector<16x1xf32>
    %108 = vector.broadcast %107 : vector<16x1xf32> to vector<16x128xf32>
    %109 = arith.mulf %108, %101 : vector<16x128xf32>
    %cst_46 = arith.constant dense<0.000000e+00> : vector<128xf32>
    %110 = vector.multi_reduction <add>, %109, %cst_46 [0] : vector<16x128xf32> to vector<128xf32>
    %111 = vector.shape_cast %110 : vector<128xf32> to vector<1x128xf32>
    %112 = arith.addf %111, %102 : vector<1x128xf32>
    %113 = vector.extract_strided_slice %100 {offsets = [0, 128], sizes = [16, 128], strides = [1, 1]} : vector<16x256xf32> to vector<16x128xf32>
    %cst_47 = arith.constant dense<0.000000e+00> : vector<16xf32>
    %114 = vector.multi_reduction <add>, %113, %cst_47 [1] : vector<16x128xf32> to vector<16xf32>
    %115 = vector.shape_cast %114 : vector<16xf32> to vector<16x1xf32>
    %cst_48 = arith.constant 1.280000e+02 : f32
    %116 = vector.broadcast %cst_48 : f32 to vector<16x1xf32>
    %117 = arith.divf %115, %116 : vector<16x1xf32>
    %118 = vector.broadcast %117 : vector<16x1xf32> to vector<16x128xf32>
    %119 = arith.mulf %118, %101 : vector<16x128xf32>
    %cst_49 = arith.constant dense<0.000000e+00> : vector<128xf32>
    %120 = vector.multi_reduction <add>, %119, %cst_49 [0] : vector<16x128xf32> to vector<128xf32>
    %121 = vector.shape_cast %120 : vector<128xf32> to vector<1x128xf32>
    %122 = arith.addf %121, %102 : vector<1x128xf32>
    %123 = tpu.concatenate %112, %122 in 0 : vector<1x128xf32>, vector<1x128xf32> -> vector<2x128xf32>
    %c0_50 = arith.constant 0 : index
    %c0_51 = arith.constant 0 : index
    %c0_52 = arith.constant 0 : index
    %124 = vector.load %arg4[%c0_50, %c0_51, %c0_52] : memref<1x2x128xf32, #tpu.memory_space<vmem>>, vector<1x2x128xf32>
    %125 = vector.shape_cast %124 : vector<1x2x128xf32> to vector<2x128xf32>
    %126 = vector.shape_cast %123 : vector<2x128xf32> to vector<1x2x128xf32>
    tpu.vector_store %arg4[%c0_50, %c0_51, %c0_52], %126 {strides = array<i32>} : memref<1x2x128xf32, #tpu.memory_space<vmem>>, vector<1x2x128xf32>,
    return
  }
  func.func @transform_0(%arg0: i32) -> (i32, i32) {
    %c0_i32 = arith.constant 0 : i32
    %c0_i32_0 = arith.constant 0 : i32
    return %c0_i32, %arg0 : i32, i32
  }
  func.func @transform_1(%arg0: i32) -> (i32, i32) {
    %c0_i32 = arith.constant 0 : i32
    %c0_i32_0 = arith.constant 0 : i32
    %c0_i32_1 = arith.constant 0 : i32
    return %c0_i32, %c0_i32_0 : i32, i32
  }
  func.func @transform_2(%arg0: i32) -> (i32, i32) {
    %c0_i32 = arith.constant 0 : i32
    %c0_i32_0 = arith.constant 0 : i32
    %c0_i32_1 = arith.constant 0 : i32
    return %c0_i32, %c0_i32_0 : i32, i32
  }
  func.func @transform_3(%arg0: i32) -> (i32, i32, i32) {
    %c0_i32 = arith.constant 0 : i32
    %c0_i32_0 = arith.constant 0 : i32
    %c0_i32_1 = arith.constant 0 : i32
    return %arg0, %c0_i32, %c0_i32_0 : i32, i32, i32
  }
}

</mosaic_0001>

<bundles_post_ra>
// kernel: tpu_custom_call.1
= control target key start
LH: loop header
LB: loop body
LE: loop exit
PB: predicated region body
PF: predicated region fallthrough
CT: control target
= control target key end

     0   :  { %8 = vsyncpa [#allocation3], 0  ;;  %s1643_s0 = inlined_call_operand.hbm [shape: bf16[8,512], index: 0, kind: input, shape index: {}]   ;;  %s1644_s1 = inlined_call_operand.hbm [shape: bf16[96,128], index: 1, kind: input, shape index: {}]   ;;  %s1645_s2 = inlined_call_operand.hbm [shape: f32[17,128], index: 2, kind: input, shape index: {}]   ;;  %s1646_s3 = inlined_call_operand.hbm [shape: f32[2,2,128], index: 3, kind: output, shape index: {}]  }
   0x1   :  { %10 = vsyncpa [#allocation3 + $0x1], 0 }
   0x2   :  { %11 = vsyncpa [#allocation6], 0 }
   0x3   :  { %12 = vsyncpa [#allocation4], 0 }
   0x4   :  { %14 = vsyncpa [#allocation4 + $0x1], 0  ;;  %s1258_s12 = smov 0   ;;  %s1260_s13 = smov 0  }
   0x5   :  { %s1262_s14 = smov 0   ;;  %s1264_s15 = smov 0  }
   0x6 LB: > { %s1279_s16 = sadd.s32 4294967295, %s1222_s15   ;;  %s874_s17 = sadd.s32 4294967294, %s1222_s15   ;;  %s1222_s15 = sphi %s1264_s15, %s1674_s15   ;;  %s1218_s14 = sphi %s1262_s14, %s1673_s14   ;;  %s1214_s13 = sphi %s1260_s13, %s1672_s13   ;;  %s1210_s12 = sphi %s1258_s12, %s1671_s12  }
   0x7   : > { %p40_p0 = scmp.ne.s32.totalorder %s1214_s13, %s1210_s12  ;;  %p1647_p1 = scmp.eq.s32.totalorder %s1279_s16, 0 }
   0x8   : > { %p112_p3 = scmp.eq.s32.totalorder %s874_s17, 1  ;;  %p875_p5 = scmp.ge.s32.totalorder %s1222_s15, 1 }
   0x9   : > { %p1288_p4 = por %p1647_p1, %p40_p0  ;;  %p119_p7 = scmp.lt.s32.totalorder %s1222_s15, 3 }
   0xa   : > { %p1293_p6 = por %p112_p3, %p40_p0  ;;  %s1224_s21 = smov [#allocation5]  }
   0xb   : > { %s1650_s18 = scalar_select %p1288_p4, 1, 0 }
   0xc   : > { %s1651_s19 = scalar_select %p1293_p6, 1, 0 }
   0xd   : > { %p1298_p8 = pnand %p875_p5, %p119_p7  ;;  %s131_s22 = sshll.u32 %s1224_s21, 4  ;;  %s1302_s22 = int_to_ptr.vmem [resolvable:$true] %s131_s22 }
   0xe   : > { %s1225_s24 = smov [#allocation7]   ;;  %s1066_s28 = scalar_lea.hbm %s1644_s1, 768 }
   0xf   : > { %p946_p9 = pneg %p1298_p8  ;;  %s144_s25 = sshll.u32 %s1225_s24, 4  ;;  %s1313_s25 = int_to_ptr.vmem [resolvable:$true] %s144_s25 }
  0x10   : > { %p1067_p12 = scmp.ne.s32.totalorder %s1644_s1, %s1066_s28  ;;  %p1073_p5 = scmp.lt.u32.totalorder %s1066_s28, %s1644_s1 }
  0x11   : > { %p1309_p11 = pnand %p946_p9, %p1647_p1 }
  0x13   : > { %p1068_p13 = pneg %p1309_p11 }
  0x15   : > { %p1069_p0 = pnand %p1068_p13, %p1067_p12 }
  0x17   : > { %p1070_p3 = pneg %p1069_p0 }
  0x19   : > { %p1075_p7 = pnand %p1073_p5, %p1070_p3 }
  0x1b   : > { %1078 = shalt.err (!%p1075_p7)
}
  0x1c   : > { %s1079_s6 = scalar_lea.vmem %s1302_s22, 768  ;;  %p1087_p2 = scmp.lt.s32.totalorder %s1302_s22, %s1302_s22 }
  0x1d   : > { %p1080_p9 = scmp.ne.s32.totalorder %s1302_s22, %s1079_s6  ;;  %p1088_p12 = scmp.lt.s32.totalorder %s1079_s6, %s1079_s6 }
  0x1f   : > { %p1082_p10 = pnand %p1080_p9, %p1068_p13  ;;  %p1089_p0 = por %p1088_p12, %p1087_p2 }
  0x21   : > { %p1083_p1 = pneg %p1082_p10 }
  0x23   : > { %p1090_p6 = pnand %p1089_p0, %p1083_p1 }
  0x25   : > { %1093 = shalt.err (!%p1090_p6)
}
  0x26   : > { %s1226_s7 = smov 64   ;;  %s1227_s8 = smov 4  }
  0x27   : > { %949 = dma.hbm_to_vmem [thread:$0]  (!%p1309_p11), %s1644_s1, 768, %s1302_s22, [#allocation6], %s1226_s7, %s1226_s7, %s1227_s8  }
  0x28   : > { %s1094_s21 = scalar_lea.hbm %s1645_s2, 384 }
  0x29   : > { %p1095_p2 = scmp.ne.s32.totalorder %s1645_s2, %s1094_s21  ;;  %p1101_p10 = scmp.lt.u32.totalorder %s1094_s21, %s1645_s2 }
  0x2b   : > { %p1097_p1 = pnand %p1095_p2, %p1068_p13 }
  0x2d   : > { %p1098_p6 = pneg %p1097_p1 }
  0x2f   : > { %p1103_p3 = pnand %p1101_p10, %p1098_p6 }
  0x31   : > { %1106 = shalt.err (!%p1103_p3)
}
  0x32   : > { %s1107_s22 = scalar_lea.vmem %s1313_s25, 384  ;;  %p1115_p12 = scmp.lt.s32.totalorder %s1313_s25, %s1313_s25 }
  0x33   : > { %p1108_p5 = scmp.ne.s32.totalorder %s1313_s25, %s1107_s22  ;;  %p1116_p0 = scmp.lt.s32.totalorder %s1107_s22, %s1107_s22 }
  0x35   : > { %p1110_p7 = pnand %p1108_p5, %p1068_p13  ;;  %p1117_p2 = por %p1116_p0, %p1115_p12 }
  0x37   : > { %p1111_p9 = pneg %p1110_p7 }
  0x39   : > { %p1118_p1 = pnand %p1117_p2, %p1111_p9 }
  0x3b   : > { %1121 = shalt.err (!%p1118_p1)
}
  0x3c   : > { %s1228_s29 = smov 128   ;;  %s1229_s30 = smov 8  }
  0x3d   : > { %952 = dma.hbm_to_vmem [thread:$0]  (!%p1309_p11), %s1645_s2, 384, %s1313_s25, [#allocation6], %s1228_s29, %s1228_s29, %s1229_s30  }
  0x3e   : > { %s1368_s6 = sadd.s32 1, %s1222_s15   ;;  %s27_s8 = sadd.s32 1, %s1218_s14 }
  0x3f   : > { %s24_s7 = ssub.s32 %s1222_s15, %s1368_s6  ;;  %p34_p6 = scmp.ne.s32.totalorder %s1218_s14, %s1214_s13 }
  0x40   : > { %p25_p13 = scmp.eq.s32.totalorder %s24_s7, 0  ;;  %p35_p10 = scmp.eq.s32.totalorder %s1222_s15, 0 }
  0x41   : > { %p1654_p5 = scmp.eq.s32.totalorder %s1279_s16, 1  ;;  %p963_p9 = scmp.lt.s32.totalorder %s1222_s15, 2 }
  0x42   : > { %s1377_s9 = scalar_select %p25_p13, %s1218_s14, %s27_s8  }
  0x43   : > { %p36_p3 = por %p35_p10, %p34_p6  ;;  %p1381_p7 = por %p1654_p5, %p34_p6 }
  0x44   : > { %s158_s23 = sand.u32 1, %s1218_s14   ;;  %s933_s25 = sshll.u32 %s1222_s15, 7 }
  0x45   : > { %s1655_s10 = scalar_select %p1381_p7, 1, 0 }
  0x46   : > { %s879_s11 = sshll.u32 %s158_s23, 3  ;;  %s1391_s24 = scalar_lea.hbm %s1643_s0, %s933_s25 }
  0x47   : > { %s162_s26 = scalar_lea.vmem [#allocation2], %s879_s11  ;;  %p1395_p11 = pnand %p963_p9, %p36_p3 }
  0x48   : > { %s170_s27 = sshll.u32 %s162_s26, 4  ;;  %s159_s22 = scalar_lea.sflag [#allocation3], %s158_s23  ;;  %s1393_s27 = int_to_ptr.vmem [resolvable:$true] %s170_s27 }
  0x49   : > { %s1122_s29 = scalar_lea.hbm %s1391_s24, 128  ;;  %p1124_p0 = pneg %p1395_p11 }
  0x4a   : > { %p1123_p12 = scmp.ne.s32.totalorder %s1391_s24, %s1122_s29  ;;  %s1127_s5 = scalar_lea.hbm %s1643_s0, 256 }
  0x4b   : > { %p1128_p13 = scmp.lt.u32.totalorder %s1391_s24, %s1643_s0  ;;  %p1129_p6 = scmp.lt.u32.totalorder %s1127_s5, %s1122_s29 }
  0x4c   : > { %p1125_p2 = pnand %p1124_p0, %p1123_p12  ;;  %p1131_p3 = scmp.lt.u32.totalorder %s1122_s29, %s1391_s24 }
  0x4d   : > { %p1130_p10 = por %p1129_p6, %p1128_p13 }
  0x4e   : > { %p1126_p1 = pneg %p1125_p2 }
  0x4f   : > { %p1132_p5 = por %p1131_p3, %p1130_p10 }
  0x51   : > { %p1133_p9 = pnand %p1132_p5, %p1126_p1 }
  0x53   : > { %1136 = shalt.err (!%p1133_p9)
}
  0x54   : > { %s1137_s23 = scalar_lea.vmem %s1393_s27, 128  ;;  %s1230_s11 = smov [#allocation2]  }
  0x55   : > { %p1138_p12 = scmp.ne.s32.totalorder %s1393_s27, %s1137_s23  ;;  %s1142_s25 = sshll.u32 %s1230_s11, 4  ;;  %s1143_s25 = int_to_ptr.vmem [resolvable:$false] %s1142_s25 }
  0x56   : > { %s1144_s17 = scalar_lea.vmem %s1143_s25, 256  ;;  %p1145_p4 = scmp.lt.s32.totalorder %s1393_s27, %s1143_s25 }
  0x57   : > { %p1140_p2 = pnand %p1138_p12, %p1124_p0  ;;  %p1146_p13 = scmp.lt.s32.totalorder %s1144_s17, %s1137_s23 }
  0x59   : > { %p1141_p7 = pneg %p1140_p2  ;;  %p1147_p6 = por %p1146_p13, %p1145_p4 }
  0x5b   : > { %p1148_p10 = pnand %p1147_p6, %p1141_p7 }
  0x5d   : > { %1151 = shalt.err (!%p1148_p10)
}
  0x5e   : > { %956 = dma.hbm_to_vmem [thread:$0]  (!%p1395_p11), %s1391_s24, 128, %s1393_s27, %s159_s22  }
  0x5f   : > { %179 = sbr.rel (%p1298_p8) target bundleno = 1917 (0x77d), region = 32  ;;  %s1427_s21 = sand.u32 (!%p1298_p8), 1, %s1214_s13  }
  0x60   : > { %s883_s26 = sshll.u32 (!%p1298_p8), %s1427_s21, 3  ;;  %s182_s29 = scalar_lea.sflag (!%p1298_p8), [#allocation3], %s1427_s21 }
  0x61   : > { %s185_s30 = scalar_lea.vmem (!%p1298_p8), [#allocation2], %s883_s26  ;;  %p1657_p4 = scmp.ne.s32.totalorder (!%p1298_p8), %s1650_s18, 0 }
  0x66   : > { %1197 = dma.done.wait (%p1657_p4), %s182_s29, 128  }
  0x67   : > { %1199 = vsyncadd (%p1657_p4), %s182_s29, 4294967168  ;;  %p1658_p7 = scmp.eq.s32.totalorder %s1279_s16, 0 }
  0x69   : > { %1201 = dma.done.wait (%p1658_p7), [#allocation6], 1152   ;;  %p1659_p11 = pmov %p1658_p7 }
  0x6a   : > { %v1231_v0 = vmov 0   ;;  %v250_v1 = vld [vmem:[%s185_s30] sm:$0xff]  ;;  %vm260_vm0 = vcmask 1043456   ;;  %v249_v5 = vld [vmem:[#allocation5] sm:$0xf]  ;;  %vm256_vm1 = vcmask 64512   ;;  %v218_v13 = vlaneseq }
  0x6b   : > { %1203 = vsyncadd (%p1659_p11), [#allocation6], 4294966144  ;;  %299 = vmatprep.mubr.bf16.mxu0 %v1231_v0  ;;  %525 = vmatprep.mubr.bf16.mxu1 %v1231_v0  ;;  %v888_v2 = vcombine.high %v250_v1, %v250_v1  ;;  %v887_v3 = vcombine.low %v250_v1, %v250_v1  ;;  %s1232_s18 = smov 1   ;;  %s1233_s20 = smov 127   ;;  %vm1234_vm5 = vmmov 1   ;;  %vm345_vm7 = vcmask 1044480  }
  0x6c   : > { %v1452_v14 = vand.u32 127, %v218_v13  ;;  %v1235_v28 = vmov 65535   ;;  %v1236_v38 = vmov 1.0   ;;  %v310_v43 = vld [vmem:[#allocation5 + $0x8] sm:$0xf]  ;;  %vm341_vm11 = vcmask 203776  }
  0x6d   : > { %889 = vmatprep.subr.msk.bf16.mxu0 %vm260_vm0, %v888_v2  ;;  %v262_v4 = vsel %vm260_vm0, %v887_v3, 0  ;;  %v346_v29 = vsel %vm260_vm0, 4294967295, %v1235_v28  ;;  %vm483_vm12 = vcmask 72704   ;;  %vm669_vm15 = vcmask 1040384   ;;  %s886_s24 = sshll.u32 %s1427_s21, 1  ;;  %s930_s27 = sshll.u32 %s1279_s16, 5 }
  0x6e   : > { %268 = vmatpush1.bf16.msra.mxu0 %v262_v4  ;;  %v220_v15 = vadd.s32 128, %v1452_v14  ;;  %vm315_vm2 = vcmp.lt.s32.totalorder %v1452_v14, 1  ;;  %vm245_vm4 = vcmp.gt.s32.totalorder %v1452_v14, 0  ;;  %vm247_vm8 = vcmp.lt.s32.totalorder %v1452_v14, 127  ;;  %s215_s28 = scalar_lea.vmem [#allocation8], %s886_s24  ;;  %s1598_s7 = scalar_lea.hbm %s1646_s3, %s930_s27 }
  0x6f   : > { %vm1476_vm9 = vmpackc.low %vm1234_vm5, %vm245_vm4  ;;  %v1493_v35 = vsel %vm345_vm7, %v346_v29, 0  ;;  %s785_s22 = sshll.u32 %s215_s28, 4  ;;  %s772_s8 = scalar_lea.sflag [#allocation4], %s1427_s21  ;;  %s1600_s22 = int_to_ptr.vmem [resolvable:$true] %s785_s22 }
  0x70   : > { %v232_v16 = vand.u32 127, %v220_v15  ;;  %vm919_vm14 = vmpackc.low %vm245_vm4, %vm245_vm4  ;;  %s1152_s23 = scalar_lea.vmem %s1600_s22, 32  ;;  %p1668_p0 = scmp.ne.s32.totalorder %s1655_s10, 0 }
  0x71   : > { %890 = vmatmul.mubr.msk.bf16.vlgmr.msra.gmra.mrb[0].mxu0 %vm256_vm1, %v249_v5  ;;  %vm925_vm1 = vmpackc.low %vm247_vm8, %vm247_vm8  ;;  %p1153_p8 = scmp.ne.s32.totalorder %s1600_s22, %s1152_s23  ;;  %s1237_s16 = smov [#allocation8]  }
  0x72   : > { %386 = vmatprep.mubr.bf16.mxu0 %v1231_v0  ;;  %vm1456_vm3 = vcmp.gt.s32.totalorder %v232_v16, 0  ;;  %vm1481_vm10 = vcmp.lt.s32.totalorder %v232_v16, 127  ;;  %s1156_s11 = sshll.u32 %s1237_s16, 4  ;;  %s1157_s11 = int_to_ptr.vmem [resolvable:$false] %s1156_s11 }
  0x73   : > { %vm1467_vm6 = vmpackc.low %vm1234_vm5, %vm1456_vm3  ;;  %p1154_p1 = pnand %p1153_p8, %p1668_p0  ;;  %s1158_s25 = scalar_lea.vmem %s1157_s11, 64 }
  0x74   : > { %vm916_vm13 = vmpackc.low %vm1456_vm3, %vm1456_vm3  ;;  %p1159_p5 = scmp.lt.s32.totalorder %s1600_s22, %s1157_s11  ;;  %p1160_p9 = scmp.lt.s32.totalorder %s1158_s25, %s1152_s23 }
  0x75   : > { %vm922_vm0 = vmpackc.low %vm1481_vm10, %vm1481_vm10  ;;  %p1155_p3 = pneg %p1154_p1 }
  0x76   : > { %p1161_p12 = por %p1160_p9, %p1159_p5 }
  0x78   : > { %p1162_p2 = pnand %p1161_p12, %p1155_p3 }
 0x144   : > { %v301_v6 = vpop.f32.mrb[0].mxu0 }
 0x145   : > { %v1444_v7 = vmax.f32 %v301_v6, 0.0  ;;  %v303_v8 = vpop.f32.mrb[1].mxu0  ;;  %v397_v6 = vld [vmem:[#allocation5 + $0x10] sm:$0xf] }
 0x146   : > { %v1446_v9 = vmax.f32 %v303_v8, 0.0  ;;  %v305_v10 = vpop.f32.mrb[2].mxu0 }
 0x147   : > { %v306_v11 = vpop.f32.mrb[3].mxu0 }
 0x148   : > { %v1011_v12 = vpack.i.bf16 %v1446_v9, %v1444_v7 }
 0x14a   : > { %1012 = vrot.lane.b32.xlu0 %v1011_v12, %s1232_s18 }
 0x14e   : > { %1017 = vrot.lane.b32.xlu0 %v1011_v12, %s1233_s20 }
 0x1bc   : > { %v1013_v17 = vpop.permute.xlu0 %1012 }
 0x1bd   : > { %v1015_v19 = vunpack.i.h.bf16 %v1013_v17  ;;  %v1014_v20 = vunpack.i.l.bf16 %v1013_v17 }
 0x1bf   : > { %v316_v21 = vsel %vm315_vm2, %v1014_v20, %v1015_v19  ;;  %v317_v22 = vsel %vm315_vm2, %v1015_v19, %v1014_v20 }
 0x1c0   : > { %v892_v24 = vpack.c.bf16 %v1446_v9, %v316_v21  ;;  %v895_v25 = vpack.c.bf16 %v1444_v7, %v317_v22  ;;  %v1018_v26 = vpop.permute.xlu0 %1017 }
 0x1c1   : > { %v1020_v30 = vunpack.i.h.bf16 %v1018_v26  ;;  %v1019_v31 = vunpack.i.l.bf16 %v1018_v26 }
 0x1c2   : > { %893 = vmatprep.subr.msk.bf16.mxu0 %vm1467_vm6, %v892_v24 }
 0x1c3   : > { %v329_v33 = vsel %vm247_vm8, %v1019_v31, %v1020_v30  ;;  %v330_v34 = vsel %vm247_vm8, %v1020_v30, %v1019_v31  ;;  %896 = vmatpush1.bf16.msk.msra.mxu0 %vm1476_vm9, %v895_v25 }
 0x1c4   : > { %v335_v36 = vsel %vm247_vm8, %v329_v33, 0.0  ;;  %v336_v37 = vsel %vm1481_vm10, %v330_v34, 0.0 }
 0x1c5   : > { %v339_v39 = vpack.c.bf16 %v1236_v38, %v335_v36  ;;  %v340_v40 = vpack.c.bf16 %v1236_v38, %v336_v37 }
 0x1c7   : > { %v352_v41 = vand.u32 %v1493_v35, %v340_v40  ;;  %v349_v42 = vand.u32 %v1493_v35, %v339_v39 }
 0x1c9   : > { %356 = vmatprep.subr.bf16.mxu0 %v352_v41 }
 0x1ca   : > { %357 = vmatpush1.bf16.msra.mxu0 %v349_v42 }
 0x1cd   : > { %897 = vmatmul.mubr.msk.bf16.vlgmr.msra.gmra.mrb[4].mxu0 %vm341_vm11, %v310_v43 }
 0x1ce   : > { %459 = vmatprep.mubr.bf16.mxu0 %v1231_v0 }
 0x2a0   : > { %v388_v44 = vpop.f32.mrb[4].mxu0 }
 0x2a1   : > { %v395_v45 = vmax.f32 %v388_v44, 0.0  ;;  %v390_v46 = vpop.f32.mrb[5].mxu0 }
 0x2a2   : > { %v396_v47 = vmax.f32 %v390_v46, 0.0  ;;  %v392_v48 = vpop.f32.mrb[6].mxu0 }
 0x2a3   : > { %v393_v49 = vpop.f32.mrb[7].mxu0  ;;  %v1064_v48 = vld [vmem:[#allocation5 + $0x28] sm:$0xff]  }
 0x2a4   : > { %v1021_v50 = vpack.i.bf16 %v396_v47, %v395_v45 }
 0x2a6   : > { %1022 = vrot.lane.b32.xlu1 %v1021_v50, %s1232_s18 }
 0x2aa   : > { %1027 = vrot.lane.b32.xlu1 %v1021_v50, %s1233_s20 }
 0x318   : > { %v1023_v51 = vpop.permute.xlu1 %1022 }
 0x319   : > { %v1025_v52 = vunpack.i.h.bf16 %v1023_v51  ;;  %v1024_v53 = vunpack.i.l.bf16 %v1023_v51 }
 0x31b   : > { %v402_v54 = vsel %vm315_vm2, %v1024_v53, %v1025_v52  ;;  %v403_v55 = vsel %vm315_vm2, %v1025_v52, %v1024_v53 }
 0x31c   : > { %v899_v56 = vpack.c.bf16 %v396_v47, %v402_v54  ;;  %v902_v57 = vpack.c.bf16 %v395_v45, %v403_v55  ;;  %v1028_v58 = vpop.permute.xlu1 %1027  ;;  %v1063_v47 = vld [vmem:[#allocation5 + $0x18] sm:$0xff]  }
 0x31d   : > { %v1030_v59 = vunpack.i.h.bf16 %v1028_v58  ;;  %v1029_v60 = vunpack.i.l.bf16 %v1028_v58 }
 0x31e   : > { %900 = vmatprep.subr.msk.bf16.mxu0 %vm1467_vm6, %v899_v56 }
 0x31f   : > { %v410_v61 = vsel %vm247_vm8, %v1029_v60, %v1030_v59  ;;  %v411_v62 = vsel %vm247_vm8, %v1030_v59, %v1029_v60  ;;  %903 = vmatpush1.bf16.msk.msra.mxu0 %vm1476_vm9, %v902_v57 }
 0x320   : > { %v412_v63 = vsel %vm247_vm8, %v410_v61, 0.0  ;;  %v413_v1 = vsel %vm1481_vm10, %v411_v62, 0.0 }
 0x321   : > { %v416_v2 = vpack.c.bf16 %v1236_v38, %v412_v63  ;;  %v417_v3 = vpack.c.bf16 %v1236_v38, %v413_v1 }
 0x323   : > { %v425_v4 = vand.u32 %v417_v3, %v1493_v35  ;;  %v422_v5 = vand.u32 %v416_v2, %v1493_v35 }
 0x325   : > { %429 = vmatprep.subr.bf16.mxu0 %v425_v4 }
 0x326   : > { %430 = vmatpush1.bf16.msra.mxu0 %v422_v5 }
 0x329   : > { %904 = vmatmul.mubr.msk.bf16.vlgmr.msra.gmra.mrb[8].mxu0 %vm341_vm11, %v397_v6 }
 0x32a   : > { %604 = vmatprep.mubr.bf16.mxu0 %v1231_v0 }
 0x3fc   : > { %v461_v8 = vpop.f32.mrb[8].mxu0 }
 0x3fd   : > { %v468_v10 = vmax.f32 %v461_v8, 0.0  ;;  %v463_v11 = vpop.f32.mrb[9].mxu0 }
 0x3fe   : > { %v469_v12 = vmax.f32 %v463_v11, 0.0  ;;  %v465_v13 = vpop.f32.mrb[10].mxu0 }
 0x3ff   : > { %v470_v15 = vadd.f32 %v468_v10, %v1444_v7  ;;  %v466_v16 = vpop.f32.mrb[11].mxu0 }
 0x400   : > { %v471_v17 = vadd.f32 %v469_v12, %v1446_v9  ;;  %v671_v16 = vsel %vm669_vm15, 65535, %v1231_v0 }
 0x401   : > { %v472_v19 = vmax.f32 %v470_v15, 0.0 }
 0x402   : > { %v473_v20 = vmax.f32 %v471_v17, 0.0 }
 0x403   : > { %v476_v21 = vpack.c.bf16 %v1236_v38, %v472_v19 }
 0x404   : > { %v1036_v22 = vpack.i.bf16 %v473_v20, %v472_v19  ;;  %v477_v24 = vpack.c.bf16 %v1236_v38, %v473_v20 }
 0x405   : > { %v488_v26 = vand.u32 %v476_v21, %v1493_v35  ;;  %v673_v21 = vand.u32 1.0|1.0, %v671_v16 }
 0x406   : > { %1037 = vrot.lane.b32.xlu1 %v1036_v22, %s1233_s20  ;;  %1032 = vrot.lane.b32.xlu0 %v1036_v22, %s1232_s18  ;;  %v491_v25 = vand.u32 %v477_v24, %v1493_v35  ;;  %v1065_v22 = vld [vmem:[#allocation5 + $0x20] sm:$0xff]  }
 0x408   : > { %493 = vmatprep.subr.bf16.mxu1 %v491_v25 }
 0x409   : > { %494 = vmatpush1.bf16.msra.mxu1 %v488_v26 }
 0x40c   : > { %906 = vmatmul.mubr.msk.bf16.vlgmr.msra.gmra.mrb[0].mxu1 %vm483_vm12, %v1064_v48 }
 0x40d   : > { %707 = vmatprep.mubr.bf16.mxu1 %v1231_v0 }
 0x478   : > { %v1038_v7 = vpop.permute.xlu1 %1037  ;;  %v1033_v28 = vpop.permute.xlu0 %1032 }
 0x479   : > { %v1040_v9 = vunpack.i.h.bf16 %v1038_v7  ;;  %v1039_v29 = vunpack.i.l.bf16 %v1038_v7  ;;  %v1035_v30 = vunpack.i.h.bf16 %v1033_v28  ;;  %v1034_v31 = vunpack.i.l.bf16 %v1033_v28 }
 0x47b   : > { %v550_v33 = vsel %vm247_vm8, %v1039_v29, %v1040_v9  ;;  %v551_v34 = vsel %vm247_vm8, %v1040_v9, %v1039_v29  ;;  %v542_v36 = vsel %vm315_vm2, %v1034_v31, %v1035_v30  ;;  %v543_v37 = vsel %vm315_vm2, %v1035_v30, %v1034_v31 }
 0x47c   : > { %v552_v39 = vsel %vm247_vm8, %v550_v33, 0.0  ;;  %v909_v40 = vpack.c.bf16 %v473_v20, %v542_v36  ;;  %v912_v41 = vpack.c.bf16 %v472_v19, %v543_v37  ;;  %v553_v42 = vsel %vm1481_vm10, %v551_v34, 0.0 }
 0x47d   : > { %v556_v43 = vpack.c.bf16 %v1236_v38, %v552_v39  ;;  %v557_v44 = vpack.c.bf16 %v1236_v38, %v553_v42 }
 0x47e   : > { %910 = vmatprep.subr.msk.bf16.mxu0 %vm1467_vm6, %v909_v40 }
 0x47f   : > { %913 = vmatpush1.bf16.msk.msra.mxu0 %vm1476_vm9, %v912_v41  ;;  %v570_v45 = vand.u32 %v557_v44, %v1493_v35  ;;  %v567_v46 = vand.u32 %v556_v43, %v1493_v35 }
 0x481   : > { %574 = vmatprep.subr.bf16.mxu0 %v570_v45 }
 0x483   : > { %575 = vmatpush1.bf16.msra.mxu0 %v567_v46  ;;  %v730_v46 = vld [vmem:[#allocation7] sm:$0xff] }
 0x486   : > { %914 = vmatmul.mubr.msk.bf16.vlgmr.msra.gmra.mrb[12].mxu0 %vm341_vm11, %v1063_v47  ;;  %v731_v47 = vld [vmem:[#allocation7 + $0x8] sm:$0xff] }
 0x4df   : > { %v527_v0 = vpop.f32.mrb[0].mxu1 }
 0x4e0   : > { %v529_v24 = vpop.f32.mrb[1].mxu1 }
 0x4e1   : > { %v531_v25 = vpop.f32.mrb[2].mxu1 }
 0x4e2   : > { %v533_v26 = vpop.f32.mrb[3].mxu1 }
 0x559   : > { %v606_v38 = vpop.f32.mrb[12].mxu0 }
 0x55a   : > { %v608_v23 = vpop.f32.mrb[13].mxu0  ;;  %v615_v50 = vmax.f32 %v606_v38, 0.0 }
 0x55b   : > { %v610_v49 = vpop.f32.mrb[14].mxu0  ;;  %v616_v52 = vmax.f32 %v608_v23, 0.0 }
 0x55c   : > { %v617_v27 = vmax.f32 %v610_v49, 0.0  ;;  %v612_v51 = vpop.f32.mrb[15].mxu0 }
 0x55d   : > { %v618_v53 = vmax.f32 %v612_v51, 0.0 }
 0x55e   : > { %v655_v54 = vpack.c.bf16 %v617_v27, %v615_v50  ;;  %v1041_v55 = vpack.i.bf16 %v617_v27, %v615_v50 }
 0x55f   : > { %v1046_v35 = vpack.i.bf16 %v618_v53, %v616_v52  ;;  %v656_v56 = vpack.c.bf16 %v618_v53, %v616_v52 }
 0x560   : > { %1042 = vrot.lane.b32.xlu0 %v1041_v55, %s1232_s18 }
 0x561   : > { %1047 = vrot.lane.b32.xlu1 %v1046_v35, %s1232_s18 }
 0x564   : > { %1052 = vrot.lane.b32.xlu0 %v1041_v55, %s1233_s20 }
 0x565   : > { %1057 = vrot.lane.b32.xlu1 %v1046_v35, %s1233_s20 }
 0x5d2   : > { %v1043_v57 = vpop.permute.xlu0 %1042 }
 0x5d3   : > { %v1045_v58 = vunpack.i.h.bf16 %v1043_v57  ;;  %v1044_v59 = vunpack.i.l.bf16 %v1043_v57  ;;  %v1048_v60 = vpop.permute.xlu1 %1047 }
 0x5d4   : > { %v1050_v61 = vunpack.i.h.bf16 %v1048_v60  ;;  %v1049_v62 = vunpack.i.l.bf16 %v1048_v60 }
 0x5d6   : > { %v630_v63 = vsel %vm315_vm2, %v1045_v58, %v1050_v61  ;;  %v632_v1 = vsel %vm315_vm2, %v1050_v61, %v1045_v58  ;;  %v629_v2 = vsel %vm315_vm2, %v1044_v59, %v1049_v62  ;;  %v631_v3 = vsel %vm315_vm2, %v1049_v62, %v1044_v59  ;;  %v1053_v4 = vpop.permute.xlu0 %1052 }
 0x5d7   : > { %v917_v5 = vpack.c.bf16 %v630_v63, %v629_v2  ;;  %v920_v6 = vpack.c.bf16 %v632_v1, %v631_v3  ;;  %v1055_v8 = vunpack.i.h.bf16 %v1053_v4  ;;  %v1054_v10 = vunpack.i.l.bf16 %v1053_v4  ;;  %v1058_v11 = vpop.permute.xlu1 %1057  ;;  %v732_v2 = vld [vmem:[#allocation7 + $0x10] sm:$0x1] }
 0x5d8   : > { %v1060_v12 = vunpack.i.h.bf16 %v1058_v11  ;;  %v1059_v13 = vunpack.i.l.bf16 %v1058_v11  ;;  %vm665_vm2 = vcmask 400384  }
 0x5d9   : > { %918 = vmatprep.subr.msk.bf16.mxu1 %vm916_vm13, %v917_v5 }
 0x5da   : > { %v648_v15 = vsel %vm247_vm8, %v1060_v12, %v1055_v8  ;;  %v647_v18 = vsel %vm247_vm8, %v1059_v13, %v1054_v10  ;;  %921 = vmatpush1.bf16.msk.msra.mxu1 %vm919_vm14, %v920_v6  ;;  %v646_v17 = vsel %vm247_vm8, %v1055_v8, %v1060_v12  ;;  %v645_v19 = vsel %vm247_vm8, %v1054_v10, %v1059_v13 }
 0x5db   : > { %677 = vmatprep.subr.bf16.mxu1 %v656_v56  ;;  %v923_v20 = vpack.c.bf16 %v648_v15, %v647_v18  ;;  %v926_v32 = vpack.c.bf16 %v646_v17, %v645_v19 }
 0x5de   : > { %678 = vmatpush1.bf16.msra.mxu1 %v655_v54 }
 0x5df   : > { %924 = vmatprep.subr.msk.bf16.mxu1 %vm922_vm0, %v923_v20 }
 0x5e2   : > { %927 = vmatpush1.bf16.msk.msra.mxu1 %vm925_vm1, %v926_v32 }
 0x5e3   : > { %681 = vmatprep.subr.bf16.mxu1 %v673_v21 }
 0x5e6   : > { %682 = vmatpush1.bf16.msra.mxu1 %v673_v21 }
 0x5e9   : > { %928 = vmatmul.mubr.msk.bf16.vlgmr.msra.gmra.mrb[4].mxu1 %vm665_vm2, %v1065_v22 }
 0x6bc   : > { %v709_v7 = vpop.f32.mrb[4].mxu1 }
 0x6bd   : > { %v718_v28 = vmax.f32 %v709_v7, 0.0  ;;  %v711_v9 = vpop.f32.mrb[5].mxu1 }
 0x6be   : > { %v719_v29 = vmax.f32 %v711_v9, 0.0  ;;  %v713_v30 = vpop.f32.mrb[6].mxu1 }
 0x6bf   : > { %v720_v14 = vmax.f32 %v713_v30, 0.0  ;;  %v715_v31 = vpop.f32.mrb[7].mxu1  ;;  %v722_v33 = vadd.f32 %v718_v28, %v527_v0 }
 0x6c0   : > { %v721_v34 = vmax.f32 %v715_v31, 0.0  ;;  %v723_v36 = vadd.f32 %v719_v29, %v529_v24 }
 0x6c1   : > { %v724_v37 = vadd.f32 %v720_v14, %v531_v25  ;;  %v726_v42 = vmax.f32 %v722_v33, 0.0 }
 0x6c2   : > { %v725_v39 = vadd.f32 %v721_v34, %v533_v26  ;;  %v727_v40 = vmax.f32 %v723_v36, 0.0 }
 0x6c3   : > { %v728_v43 = vmax.f32 %v724_v37, 0.0 }
 0x6c4   : > { %750 = vadd.xlane.f32.xlu0 %v727_v40  ;;  %v729_v41 = vmax.f32 %v725_v39, 0.0 }
 0x6c6   : > { %752 = vadd.xlane.f32.xlu1 %v729_v41 }
 0x6c8   : > { %733 = vadd.xlane.f32.xlu0 %v726_v42 }
 0x6cc   : > { %735 = vadd.xlane.f32.xlu0 %v728_v43 }
 0x751   : > { %v751_v44 = vpop.xlane.xlu0 %750 }
 0x752   : > { %v754_v45 = vmul.f32 0.0078125, %v751_v44 }
 0x753   : > { %v753_v48 = vpop.xlane.xlu1 %752 }
 0x754   : > { %v755_v38 = vmul.f32 0.0078125, %v753_v48  ;;  %v756_v49 = vmul.f32 %v754_v45, %v730_v46 }
 0x755   : > { %v734_v23 = vpop.xlane.xlu0 %733 }
 0x756   : > { %v757_v50 = vmul.f32 %v755_v38, %v731_v47  ;;  %v738_v51 = vmul.f32 0.0078125, %v734_v23 }
 0x758   : > { %v758_v27 = vadd.f32 %v757_v50, %v756_v49  ;;  %v740_v35 = vmul.f32 %v738_v51, %v730_v46 }
 0x759   : > { %v736_v52 = vpop.xlane.xlu0 %735 }
 0x75a   : > { %v759_v53 = vrot.slane %v758_v27, 4  ;;  %v739_v54 = vmul.f32 0.0078125, %v736_v52 }
 0x75c   : > { %v760_v55 = vadd.f32 %v759_v53, %v758_v27  ;;  %v741_v56 = vmul.f32 %v739_v54, %v731_v47 }
 0x75e   : > { %v761_v57 = vrot.slane %v760_v55, 2  ;;  %v742_v58 = vadd.f32 %v741_v56, %v740_v35 }
 0x760   : > { %v762_v59 = vadd.f32 %v761_v57, %v760_v55  ;;  %v743_v60 = vrot.slane %v742_v58, 4 }
 0x762   : > { %v763_v61 = vrot.slane %v762_v59, 1  ;;  %v744_v62 = vadd.f32 %v743_v60, %v742_v58 }
 0x764   : > { %v764_v63 = vadd.f32 %v763_v61, %v762_v59  ;;  %v745_v1 = vrot.slane %v744_v62, 2 }
 0x766   : > { %v746_v3 = vadd.f32 %v745_v1, %v744_v62  ;;  %v765_v4 = vadd.f32 %v764_v63, %v732_v2 }
 0x768   : > { %v747_v5 = vrot.slane %v746_v3, 1  ;;  %v767_v8 = vrot.slane %v765_v4, 7 }
 0x76a   : > { %v748_v6 = vadd.f32 %v747_v5, %v746_v3 }
 0x76c   : > { %v749_v10 = vadd.f32 %v748_v6, %v732_v2 }
 0x76e   : > { %v769_v11 = vsel %vm669_vm15, %v749_v10, %v767_v8 }
 0x76f   : > { %770 = vst [vmem:[%s215_s28] sm:$0x3] %v769_v11 }
 0x770   : > { %1165 = shalt.err (!%p1162_p2)
}
 0x771   : > { %s1166_s17 = scalar_lea.hbm %s1598_s7, 32  ;;  %s1170_s29 = scalar_lea.hbm %s1646_s3, 64 }
 0x772   : > { %p1167_p13 = scmp.ne.s32.totalorder %s1598_s7, %s1166_s17  ;;  %p1171_p4 = scmp.lt.u32.totalorder %s1598_s7, %s1646_s3 }
 0x773   : > { %p1172_p7 = scmp.lt.u32.totalorder %s1170_s29, %s1166_s17  ;;  %p1174_p8 = scmp.lt.u32.totalorder %s1166_s17, %s1598_s7 }
 0x774   : > { %p1168_p6 = pnand %p1167_p13, %p1668_p0 }
 0x775   : > { %p1173_p11 = por %p1172_p7, %p1171_p4 }
 0x776   : > { %p1169_p10 = pneg %p1168_p6 }
 0x777   : > { %p1175_p1 = por %p1174_p8, %p1173_p11 }
 0x779   : > { %p1176_p3 = pnand %p1175_p1, %p1169_p10 }
 0x77b   : > { %1179 = shalt.err (!%p1176_p3)
}
 0x77c   : > { %944 = dma.vmem_to_hbm [thread:$0]  (%p1668_p0), %s1600_s22, 32, %s1598_s7, %s772_s8  }
 0x77d PF: > { %s797_s20 = sand.u32 1, %s1210_s12   ;;  %p1669_p5 = scmp.ne.s32.totalorder %s1651_s19, 0 }
 0x77e   : > { %p1670_p9 = scmp.ge.s32.totalorder %s1222_s15, 2  ;;  %s798_s24 = scalar_lea.sflag [#allocation4], %s797_s20 }
 0x780   : > { %p958_p12 = pnand %p1670_p9, %p1669_p5 }
 0x782   : > { %1205 = dma.done.wait (!%p958_p12), %s798_s24, 32  }
 0x783   : > { %1207 = vsyncadd (!%p958_p12), %s798_s24, 4294967264  ;;  %p17_p2 = scmp.ge.s32.totalorder %s1368_s6, 4   ;;  %s1671_s12 = smov %s1214_s13 }
 0x784   : > { %s1672_s13 = smov %s1218_s14  ;;  %s1673_s14 = smov %s1377_s9 }
 0x785   : > { %s1674_s15 = smov %s1368_s6  ;;  %19 = sbr.rel (!%p17_p2) target bundleno = 6 (0x6), region = 85 }
 0x78c   :  { %803 = vsyncpa [#allocation3], 1 }
 0x78d   :  { %805 = vsyncpa [#allocation3 + $0x1], 1 }
 0x78e   :  { %806 = vsyncpa [#allocation6], 1 }
 0x78f   :  { %807 = vsyncpa [#allocation4], 1 }
 0x790   :  { %809 = vsyncpa [#allocation4 + $0x1], 1 }

</bundles_post_ra>
